<compile_context>
chip_gen: v7x
topology: tpu7x:2x2x1
jax: 0.10.0
libtpu: 0.0.40
codegen_flags: <defaults>
</compile_context>

<pallas_src>
import functools

import jax
import jax.numpy as jnp
from jax.experimental import pallas as pl
from jax.experimental.pallas import tpu as pltpu


def _round_up(v, m):
    return ((v + m - 1) // m) * m


def _cdiv(a, b):
    return (a + b - 1) // b


def _vmem_limit_bytes(need_bytes):
    """Generation-aware VMEM budget: never below need, capped at 3/4 physical."""
    phys = 64 << 20                      # conservative fallback (v7x per-TC)
    try:
        phys = int(pltpu.get_tpu_info().vmem_capacity_bytes)
    except Exception:
        pass
    cap = (phys * 3) // 4
    want = max(2 * need_bytes, 16 << 20)
    return int(max(min(cap, want), need_bytes + (1 << 20)))


# --------------------------------------------------------------------------
# Pallas kernel:  out = act(x @ w + b)   (single K block, f32 accumulation)
# --------------------------------------------------------------------------
def _mm_bias_act_kernel(x_ref, w_ref, b_ref, o_ref, *, relu):
    acc = jnp.dot(x_ref[...], w_ref[...], preferred_element_type=jnp.float32)
    acc = acc + b_ref[...]                       # (1, tn) broadcasts over rows
    if relu:
        acc = jnp.maximum(acc, 0.0)
    o_ref[...] = acc.astype(o_ref.dtype)


def mm_bias_act(x, w_pad, b_pad, n_out, *, relu=True, out_dtype=jnp.float32):
    """act(x @ w + b) via a 2-D parallel, pipelined Pallas TPU kernel.

    x:      (M, K)   float (cast to bf16 for the MXU); K is NOT padded.
    w_pad:  (K, Np)  bf16, N padded to a multiple of 128 (K-order matches x).
    b_pad:  (1, Np)  f32.
    Returns (M, n_out) in `out_dtype`.
    """
    M, K = x.shape
    Kw, Np = w_pad.shape
    assert K == Kw and b_pad.shape == (1, Np) and Np % 128 == 0

    # N tiling: use the full 256-wide MXU when the padded N allows it.
    tn = 256 if Np % 256 == 0 else 128
    n_j = Np // tn

    # M tiling: big tiles (grid steps cost ~0.35us each); bf16 likes 16-row
    # multiples; fall back to the full-dim block for tiny M (no divisibility
    # requirement then, and block never exceeds the array).
    tm = min(1024, _round_up(M, 16))
    if tm > M:
        tm = M
    # v7x megacore: make sure there are at least 2 parallel tiles when M allows.
    if n_j * _cdiv(M, tm) < 2:
        half = _round_up(_cdiv(M, 2), 16)
        if 16 <= half < tm:
            tm = half
    n_i = _cdiv(M, tm)

    xp = x.astype(jnp.bfloat16)

    out_itemsize = jnp.dtype(out_dtype).itemsize
    cost = pl.CostEstimate(
        flops=2 * M * K * Np,
        transcendentals=0,
        bytes_accessed=M * K * 2 + K * Np * 2 + Np * 4 + M * Np * out_itemsize)

    # Double-buffered inputs + output working set.
    need = 2 * (tm * K * 2 + K * tn * 2 + tn * 4 + tm * tn * out_itemsize)

    out = pl.pallas_call(
        functools.partial(_mm_bias_act_kernel, relu=relu),
        out_shape=jax.ShapeDtypeStruct((M, Np), out_dtype),
        grid=(n_i, n_j),
        in_specs=[
            pl.BlockSpec((tm, K), lambda i, j: (i, 0)),
            pl.BlockSpec((K, tn), lambda i, j: (0, j)),   # resident across i
            pl.BlockSpec((1, tn), lambda i, j: (0, j)),   # bias per N tile
        ],
        out_specs=pl.BlockSpec((tm, tn), lambda i, j: (i, j)),
        compiler_params=pltpu.CompilerParams(
            dimension_semantics=("parallel", "parallel"),
            vmem_limit_bytes=_vmem_limit_bytes(need)),
        cost_estimate=cost,
    )(xp, w_pad, b_pad)
    # Lane-dense (128-wide) kernel output; the narrow channel slice fuses into
    # the consumer under jit (next layer's im2col / final return).
    return out[:, :n_out]


# --------------------------------------------------------------------------
# NHWC im2col (XLA-side layout glue, fused under jit).
# K-order is (KH, KW, C), lane dim = channels.
# TODO(synk): replace with in-kernel implicit-GEMM patch streaming.
# --------------------------------------------------------------------------
def _im2col_nhwc(x, kh, kw, sh, sw):
    n, h, w, c = x.shape
    oh = (h - kh) // sh + 1
    ow = (w - kw) // sw + 1
    cols = []
    for i in range(kh):
        for j in range(kw):
            patch = jax.lax.slice(
                x, (0, i, j, 0),
                (n, i + sh * (oh - 1) + 1, j + sw * (ow - 1) + 1, c),
                (1, sh, sw, 1))                    # (N, OH, OW, C)
            cols.append(patch)
    cols = jnp.stack(cols, axis=3)                 # (N, OH, OW, KH*KW, C)
    return cols.reshape(n * oh * ow, kh * kw * c), oh, ow


# --------------------------------------------------------------------------
# ConvNet port
# --------------------------------------------------------------------------
class ConvNetPallas:
    """Pallas port of ConvNet: (Conv2d+ReLU)* -> flatten -> Linear(+ReLU)."""

    def __init__(self, obs_shape, dims=(32, 64, 64, 128), kernels=(8, 4, 3),
                 strides=(4, 2, 1), output_relu=True, divide255=True,
                 action_dim=0, seed=0):
        self.divide255 = divide255
        self.kernels = tuple(kernels)
        self.strides = tuple(strides)
        self.output_relu = output_relu
        self.action_dim = action_dim

        c_obs, h, w = obs_shape
        c_in = c_obs + action_dim
        dims = (c_in,) + tuple(dims)
        assert len(dims) >= 2

        key = jax.random.PRNGKey(seed)
        keys = jax.random.split(key, 2 * len(dims))

        # Reference (PyTorch-layout) parameters, kept in f32.
        self.conv_params = []
        hh, ww = h, w
        for i in range(len(dims) - 2):
            k, s = kernels[i], strides[i]
            wshape = (dims[i + 1], dims[i], k, k)          # OIHW, as nn.Conv2d
            wi = 0.05 * jax.random.normal(keys[2 * i], wshape, jnp.float32)
            bi = 0.05 * jax.random.normal(keys[2 * i + 1], (dims[i + 1],),
                                          jnp.float32)
            self.conv_params.append((wi, bi))
            hh = (hh - k) // s + 1
            ww = (ww - k) // s + 1
        c_last = dims[-2]
        feat = c_last * hh * ww                             # == feature_size()
        self.lin_w = 0.05 * jax.random.normal(keys[-2], (dims[-1], feat),
                                              jnp.float32)
        self.lin_b = 0.05 * jax.random.normal(keys[-1], (dims[-1],),
                                              jnp.float32)
        self.out_dim = dims[-1]
        self._output_shape = (dims[-1],)

        # ---- Pallas-side constants: pre-transposed, N-padded, bf16. ----
        self.conv_prepped = []
        for i, (wi, bi) in enumerate(self.conv_params):
            oc, cin, k, _ = wi.shape
            w_use = wi
            if i == 0 and divide255:
                # Fold the 1/255 preprocessing into the obs input channels
                # (action channels are intentionally unscaled, as in the ref).
                w_use = w_use.at[:, :c_obs, :, :].multiply(1.0 / 255.0)
            w_mat = w_use.transpose(2, 3, 1, 0).reshape(k * k * cin, oc)
            w_pad, b_pad = self._prep(w_mat, bi)
            self.conv_prepped.append((w_pad, b_pad, oc))

        # Linear weight: permute feature order (C,H,W) -> (H,W,C) so it applies
        # directly to the NHWC flatten (matches torch's NCHW .reshape flatten).
        lw = self.lin_w.reshape(self.out_dim, c_last, hh, ww)
        lw = lw.transpose(0, 2, 3, 1).reshape(self.out_dim, feat).T  # (feat, out)
        self.lin_prepped = self._prep(lw, self.lin_b)

        # One jitted program for the whole forward: im2col slices, reshapes and
        # channel slices become fused XLA glue; weights stay device resident.
        self._fwd = jax.jit(self._forward)

    @staticmethod
    def _prep(w_mat, b):
        K, N = w_mat.shape
        Np = _round_up(N, 128)                      # lane-dense output width
        w_pad = jnp.pad(w_mat, ((0, 0), (0, Np - N))).astype(jnp.bfloat16)
        b_pad = jnp.pad(b.reshape(1, N).astype(jnp.float32),
                        ((0, 0), (0, Np - N)))
        return w_pad, b_pad

    @property
    def output_shape(self):
        return self._output_shape

    def _forward(self, x, a):
        assert x.ndim == 4, f"Input shape ({x.shape}) is not image!"
        # 1/255 preprocessing is folded into the first conv's weights.
        x = x.astype(jnp.bfloat16)
        if a is not None:
            if a.ndim < x.ndim:
                a = jnp.broadcast_to(a[:, :, None, None],
                                     (a.shape[0], a.shape[1],
                                      x.shape[2], x.shape[3]))
            x = jnp.concatenate((x, a.astype(jnp.bfloat16)), axis=1)
        h = jnp.transpose(x, (0, 2, 3, 1))        # NCHW -> NHWC, once at entry
        n = h.shape[0]
        for (w_pad, b_pad, oc), k, s in zip(self.conv_prepped, self.kernels,
                                            self.strides):
            cols, oh, ow = _im2col_nhwc(h, k, k, s, s)
            out = mm_bias_act(cols, w_pad, b_pad, oc, relu=True,
                              out_dtype=jnp.bfloat16)
            h = out.reshape(n, oh, ow, oc)        # stays NHWC (lane = channels)
        h = h.reshape(n, -1)                      # NHWC flatten (weights permuted)
        w_pad, b_pad = self.lin_prepped
        return mm_bias_act(h, w_pad, b_pad, self.out_dim,
                           relu=self.output_relu, out_dtype=jnp.float32)

    def __call__(self, x, a=None):
        return self._fwd(x, a)


# --------------------------------------------------------------------------
if __name__ == "__main__":
    # Default kernels (8,4,3) / strides (4,2,1) with 'valid' padding need
    # spatial >= 36 to stay positive through the stack, so use 36x36 images.
    obs_shape = (4, 36, 36)
    batch = 2
    net = ConvNetPallas(obs_shape, dims=(16, 32, 32, 64))

    key = jax.random.PRNGKey(0)
    x = jax.random.randint(key, (batch,) + obs_shape, 0, 256,
                           dtype=jnp.int32).astype(jnp.uint8)

    out = jax.block_until_ready(net(x))

    # Pure-JAX f32 reference (same semantics as the PyTorch forward) using the
    # original, unfolded parameters.
    def ref(xi):
        h = xi.astype(jnp.float32) / 255.0
        for (w, b), s in zip(net.conv_params, net.strides):
            h = jax.lax.conv_general_dilated(
                h, w, (s, s), "VALID",
                dimension_numbers=("NCHW", "OIHW", "NCHW"),
                precision=jax.lax.Precision.HIGHEST)
            h = jax.nn.relu(h + b[None, :, None, None])
        h = h.reshape(h.shape[0], -1)
        h = jnp.matmul(h, net.lin_w.T,
                       precision=jax.lax.Precision.HIGHEST) + net.lin_b
        return jax.nn.relu(h) if net.output_relu else h

    expected = ref(x)
    assert out.shape == (batch, 64), out.shape
    # bf16 MXU operands with f32 accumulation -> loosened tolerance vs f32 ref.
    assert jnp.allclose(out, expected, atol=3e-2, rtol=3e-2), \
        float(jnp.max(jnp.abs(out - expected)))
    print("KERNEL_OK")
</pallas_src>

<mosaic_0001>
module attributes {stable_mosaic.version = 11 : i64} {
  func.func @_mm_bias_act_kernel(%arg0: i32, %arg1: i32, %arg2: memref<64x256xbf16, #tpu.memory_space<vmem>>, %arg3: memref<256x128xbf16, #tpu.memory_space<vmem>>, %arg4: memref<1x128xf32, #tpu.memory_space<vmem>>, %arg5: memref<64x128xbf16, #tpu.memory_space<vmem>>) attributes {dimension_semantics = [#tpu.dimension_semantics<parallel>, #tpu.dimension_semantics<parallel>], iteration_bounds = array<i64: 2, 1>, scalar_prefetch = 0 : i64, scratch_operands = 0 : i64, tpu.core_type = #tpu.core_type<tc>, window_params = [{transform_indices = @transform_0, window_bounds = array<i64: 64, 256>}, {transform_indices = @transform_1, window_bounds = array<i64: 256, 128>}, {transform_indices = @transform_2, window_bounds = array<i64: 1, 128>}, {transform_indices = @transform_3, window_bounds = array<i64: 64, 128>}]} {
    %c0 = arith.constant 0 : index
    %c0_0 = arith.constant 0 : index
    %0 = vector.load %arg2[%c0, %c0_0] : memref<64x256xbf16, #tpu.memory_space<vmem>>, vector<64x256xbf16>
    %c0_1 = arith.constant 0 : index
    %c0_2 = arith.constant 0 : index
    %1 = vector.load %arg3[%c0_1, %c0_2] : memref<256x128xbf16, #tpu.memory_space<vmem>>, vector<256x128xbf16>
    %cst = arith.constant dense<0.000000e+00> : vector<64x128xf32>
    %2 = tpu.matmul %0, %1, %cst {dimension_numbers = #tpu.dot_dimension_numbers<[1], [0], [0], [1], [0, 0, 1, 1], [], []>} : vector<64x256xbf16>, vector<256x128xbf16>, vector<64x128xf32> -> vector<64x128xf32>
    %c0_3 = arith.constant 0 : index
    %c0_4 = arith.constant 0 : index
    %3 = vector.load %arg4[%c0_3, %c0_4] : memref<1x128xf32, #tpu.memory_space<vmem>>, vector<1x128xf32>
    %4 = vector.broadcast %3 : vector<1x128xf32> to vector<64x128xf32>
    %5 = arith.addf %2, %4 : vector<64x128xf32>
    %cst_5 = arith.constant 0.000000e+00 : f32
    %6 = vector.broadcast %cst_5 : f32 to vector<64x128xf32>
    %7 = arith.maximumf %5, %6 : vector<64x128xf32>
    %8 = arith.truncf %7 : vector<64x128xf32> to vector<64x128xbf16>
    %c0_6 = arith.constant 0 : index
    %c0_7 = arith.constant 0 : index
    %9 = vector.load %arg5[%c0_6, %c0_7] : memref<64x128xbf16, #tpu.memory_space<vmem>>, vector<64x128xbf16>
    tpu.vector_store %arg5[%c0_6, %c0_7], %8 {strides = array<i32>} : memref<64x128xbf16, #tpu.memory_space<vmem>>, vector<64x128xbf16>,
    return
  }
  func.func @transform_0(%arg0: i32, %arg1: i32) -> (i32, i32) {
    %c0_i32 = arith.constant 0 : i32
    %c0_i32_0 = arith.constant 0 : i32
    return %arg0, %c0_i32 : i32, i32
  }
  func.func @transform_1(%arg0: i32, %arg1: i32) -> (i32, i32) {
    %c0_i32 = arith.constant 0 : i32
    %c0_i32_0 = arith.constant 0 : i32
    return %c0_i32, %arg1 : i32, i32
  }
  func.func @transform_2(%arg0: i32, %arg1: i32) -> (i32, i32) {
    %c0_i32 = arith.constant 0 : i32
    %c0_i32_0 = arith.constant 0 : i32
    return %c0_i32, %arg1 : i32, i32
  }
  func.func @transform_3(%arg0: i32, %arg1: i32) -> (i32, i32) {
    %c0_i32 = arith.constant 0 : i32
    return %arg0, %arg1 : i32, i32
  }
}

module attributes {stable_mosaic.version = 11 : i64} {
  func.func @_mm_bias_act_kernel(%arg0: i32, %arg1: i32, %arg2: memref<16x256xbf16, #tpu.memory_space<vmem>>, %arg3: memref<256x128xbf16, #tpu.memory_space<vmem>>, %arg4: memref<1x128xf32, #tpu.memory_space<vmem>>, %arg5: memref<16x128xbf16, #tpu.memory_space<vmem>>) attributes {dimension_semantics = [#tpu.dimension_semantics<parallel>, #tpu.dimension_semantics<parallel>], iteration_bounds = array<i64: 2, 1>, scalar_prefetch = 0 : i64, scratch_operands = 0 : i64, tpu.core_type = #tpu.core_type<tc>, window_params = [{transform_indices = @transform_0, window_bounds = array<i64: 16, 256>}, {transform_indices = @transform_1, window_bounds = array<i64: 256, 128>}, {transform_indices = @transform_2, window_bounds = array<i64: 1, 128>}, {transform_indices = @transform_3, window_bounds = array<i64: 16, 128>}]} {
    %c0 = arith.constant 0 : index
    %c0_0 = arith.constant 0 : index
    %0 = vector.load %arg2[%c0, %c0_0] : memref<16x256xbf16, #tpu.memory_space<vmem>>, vector<16x256xbf16>
    %c0_1 = arith.constant 0 : index
    %c0_2 = arith.constant 0 : index
    %1 = vector.load %arg3[%c0_1, %c0_2] : memref<256x128xbf16, #tpu.memory_space<vmem>>, vector<256x128xbf16>
    %cst = arith.constant dense<0.000000e+00> : vector<16x128xf32>
    %2 = tpu.matmul %0, %1, %cst {dimension_numbers = #tpu.dot_dimension_numbers<[1], [0], [0], [1], [0, 0, 1, 1], [], []>} : vector<16x256xbf16>, vector<256x128xbf16>, vector<16x128xf32> -> vector<16x128xf32>
    %c0_3 = arith.constant 0 : index
    %c0_4 = arith.constant 0 : index
    %3 = vector.load %arg4[%c0_3, %c0_4] : memref<1x128xf32, #tpu.memory_space<vmem>>, vector<1x128xf32>
    %4 = vector.broadcast %3 : vector<1x128xf32> to vector<16x128xf32>
    %5 = arith.addf %2, %4 : vector<16x128xf32>
    %cst_5 = arith.constant 0.000000e+00 : f32
    %6 = vector.broadcast %cst_5 : f32 to vector<16x128xf32>
    %7 = arith.maximumf %5, %6 : vector<16x128xf32>
    %8 = arith.truncf %7 : vector<16x128xf32> to vector<16x128xbf16>
    %c0_6 = arith.constant 0 : index
    %c0_7 = arith.constant 0 : index
    %9 = vector.load %arg5[%c0_6, %c0_7] : memref<16x128xbf16, #tpu.memory_space<vmem>>, vector<16x128xbf16>
    tpu.vector_store %arg5[%c0_6, %c0_7], %8 {strides = array<i32>} : memref<16x128xbf16, #tpu.memory_space<vmem>>, vector<16x128xbf16>,
    return
  }
  func.func @transform_0(%arg0: i32, %arg1: i32) -> (i32, i32) {
    %c0_i32 = arith.constant 0 : i32
    %c0_i32_0 = arith.constant 0 : i32
    return %arg0, %c0_i32 : i32, i32
  }
  func.func @transform_1(%arg0: i32, %arg1: i32) -> (i32, i32) {
    %c0_i32 = arith.constant 0 : i32
    %c0_i32_0 = arith.constant 0 : i32
    return %c0_i32, %arg1 : i32, i32
  }
  func.func @transform_2(%arg0: i32, %arg1: i32) -> (i32, i32) {
    %c0_i32 = arith.constant 0 : i32
    %c0_i32_0 = arith.constant 0 : i32
    return %c0_i32, %arg1 : i32, i32
  }
  func.func @transform_3(%arg0: i32, %arg1: i32) -> (i32, i32) {
    %c0_i32 = arith.constant 0 : i32
    return %arg0, %arg1 : i32, i32
  }
}

module attributes {stable_mosaic.version = 11 : i64} {
  func.func @_mm_bias_act_kernel(%arg0: i32, %arg1: i32, %arg2: memref<2x288xbf16, #tpu.memory_space<vmem>>, %arg3: memref<288x128xbf16, #tpu.memory_space<vmem>>, %arg4: memref<1x128xf32, #tpu.memory_space<vmem>>, %arg5: memref<2x128xbf16, #tpu.memory_space<vmem>>) attributes {dimension_semantics = [#tpu.dimension_semantics<parallel>, #tpu.dimension_semantics<parallel>], iteration_bounds = array<i64: 1, 1>, scalar_prefetch = 0 : i64, scratch_operands = 0 : i64, tpu.core_type = #tpu.core_type<tc>, window_params = [{transform_indices = @transform_0, window_bounds = array<i64: 2, 288>}, {transform_indices = @transform_1, window_bounds = array<i64: 288, 128>}, {transform_indices = @transform_2, window_bounds = array<i64: 1, 128>}, {transform_indices = @transform_3, window_bounds = array<i64: 2, 128>}]} {
    %c0 = arith.constant 0 : index
    %c0_0 = arith.constant 0 : index
    %0 = vector.load %arg2[%c0, %c0_0] : memref<2x288xbf16, #tpu.memory_space<vmem>>, vector<2x288xbf16>
    %c0_1 = arith.constant 0 : index
    %c0_2 = arith.constant 0 : index
    %1 = vector.load %arg3[%c0_1, %c0_2] : memref<288x128xbf16, #tpu.memory_space<vmem>>, vector<288x128xbf16>
    %cst = arith.constant dense<0.000000e+00> : vector<2x128xf32>
    %2 = tpu.matmul %0, %1, %cst {dimension_numbers = #tpu.dot_dimension_numbers<[1], [0], [0], [1], [0, 0, 1, 1], [], []>} : vector<2x288xbf16>, vector<288x128xbf16>, vector<2x128xf32> -> vector<2x128xf32>
    %c0_3 = arith.constant 0 : index
    %c0_4 = arith.constant 0 : index
    %3 = vector.load %arg4[%c0_3, %c0_4] : memref<1x128xf32, #tpu.memory_space<vmem>>, vector<1x128xf32>
    %4 = vector.broadcast %3 : vector<1x128xf32> to vector<2x128xf32>
    %5 = arith.addf %2, %4 : vector<2x128xf32>
    %cst_5 = arith.constant 0.000000e+00 : f32
    %6 = vector.broadcast %cst_5 : f32 to vector<2x128xf32>
    %7 = arith.maximumf %5, %6 : vector<2x128xf32>
    %8 = arith.truncf %7 : vector<2x128xf32> to vector<2x128xbf16>
    %c0_6 = arith.constant 0 : index
    %c0_7 = arith.constant 0 : index
    %9 = vector.load %arg5[%c0_6, %c0_7] : memref<2x128xbf16, #tpu.memory_space<vmem>>, vector<2x128xbf16>
    tpu.vector_store %arg5[%c0_6, %c0_7], %8 {strides = array<i32>} : memref<2x128xbf16, #tpu.memory_space<vmem>>, vector<2x128xbf16>,
    return
  }
  func.func @transform_0(%arg0: i32, %arg1: i32) -> (i32, i32) {
    %c0_i32 = arith.constant 0 : i32
    %c0_i32_0 = arith.constant 0 : i32
    return %arg0, %c0_i32 : i32, i32
  }
  func.func @transform_1(%arg0: i32, %arg1: i32) -> (i32, i32) {
    %c0_i32 = arith.constant 0 : i32
    %c0_i32_0 = arith.constant 0 : i32
    return %c0_i32, %arg1 : i32, i32
  }
  func.func @transform_2(%arg0: i32, %arg1: i32) -> (i32, i32) {
    %c0_i32 = arith.constant 0 : i32
    %c0_i32_0 = arith.constant 0 : i32
    return %c0_i32, %arg1 : i32, i32
  }
  func.func @transform_3(%arg0: i32, %arg1: i32) -> (i32, i32) {
    %c0_i32 = arith.constant 0 : i32
    return %arg0, %arg1 : i32, i32
  }
}

module attributes {stable_mosaic.version = 11 : i64} {
  func.func @_mm_bias_act_kernel(%arg0: i32, %arg1: i32, %arg2: memref<2x32xbf16, #tpu.memory_space<vmem>>, %arg3: memref<32x128xbf16, #tpu.memory_space<vmem>>, %arg4: memref<1x128xf32, #tpu.memory_space<vmem>>, %arg5: memref<2x128xf32, #tpu.memory_space<vmem>>) attributes {dimension_semantics = [#tpu.dimension_semantics<parallel>, #tpu.dimension_semantics<parallel>], iteration_bounds = array<i64: 1, 1>, scalar_prefetch = 0 : i64, scratch_operands = 0 : i64, tpu.core_type = #tpu.core_type<tc>, window_params = [{transform_indices = @transform_0, window_bounds = array<i64: 2, 32>}, {transform_indices = @transform_1, window_bounds = array<i64: 32, 128>}, {transform_indices = @transform_2, window_bounds = array<i64: 1, 128>}, {transform_indices = @transform_3, window_bounds = array<i64: 2, 128>}]} {
    %c0 = arith.constant 0 : index
    %c0_0 = arith.constant 0 : index
    %0 = vector.load %arg2[%c0, %c0_0] : memref<2x32xbf16, #tpu.memory_space<vmem>>, vector<2x32xbf16>
    %c0_1 = arith.constant 0 : index
    %c0_2 = arith.constant 0 : index
    %1 = vector.load %arg3[%c0_1, %c0_2] : memref<32x128xbf16, #tpu.memory_space<vmem>>, vector<32x128xbf16>
    %cst = arith.constant dense<0.000000e+00> : vector<2x128xf32>
    %2 = tpu.matmul %0, %1, %cst {dimension_numbers = #tpu.dot_dimension_numbers<[1], [0], [0], [1], [0, 0, 1, 1], [], []>} : vector<2x32xbf16>, vector<32x128xbf16>, vector<2x128xf32> -> vector<2x128xf32>
    %c0_3 = arith.constant 0 : index
    %c0_4 = arith.constant 0 : index
    %3 = vector.load %arg4[%c0_3, %c0_4] : memref<1x128xf32, #tpu.memory_space<vmem>>, vector<1x128xf32>
    %4 = vector.broadcast %3 : vector<1x128xf32> to vector<2x128xf32>
    %5 = arith.addf %2, %4 : vector<2x128xf32>
    %cst_5 = arith.constant 0.000000e+00 : f32
    %6 = vector.broadcast %cst_5 : f32 to vector<2x128xf32>
    %7 = arith.maximumf %5, %6 : vector<2x128xf32>
    %c0_6 = arith.constant 0 : index
    %c0_7 = arith.constant 0 : index
    %8 = vector.load %arg5[%c0_6, %c0_7] : memref<2x128xf32, #tpu.memory_space<vmem>>, vector<2x128xf32>
    tpu.vector_store %arg5[%c0_6, %c0_7], %7 {strides = array<i32>} : memref<2x128xf32, #tpu.memory_space<vmem>>, vector<2x128xf32>,
    return
  }
  func.func @transform_0(%arg0: i32, %arg1: i32) -> (i32, i32) {
    %c0_i32 = arith.constant 0 : i32
    %c0_i32_0 = arith.constant 0 : i32
    return %arg0, %c0_i32 : i32, i32
  }
  func.func @transform_1(%arg0: i32, %arg1: i32) -> (i32, i32) {
    %c0_i32 = arith.constant 0 : i32
    %c0_i32_0 = arith.constant 0 : i32
    return %c0_i32, %arg1 : i32, i32
  }
  func.func @transform_2(%arg0: i32, %arg1: i32) -> (i32, i32) {
    %c0_i32 = arith.constant 0 : i32
    %c0_i32_0 = arith.constant 0 : i32
    return %c0_i32, %arg1 : i32, i32
  }
  func.func @transform_3(%arg0: i32, %arg1: i32) -> (i32, i32) {
    %c0_i32 = arith.constant 0 : i32
    return %arg0, %arg1 : i32, i32
  }
}

</mosaic_0001>

<bundles_post_ra>
// kernel: _forward.4
= control target key start
LH: loop header
LB: loop body
LE: loop exit
PB: predicated region body
PF: predicated region fallthrough
CT: control target
= control target key end

     0   :  { %s858_s12 = smov 0   ;;  %s860_s13 = smov 0   ;;  %s956_s0 = inlined_call_operand.vmem [shape: bf16[128,256], index: 0, kind: input, shape index: {}]   ;;  %s957_s1 = inlined_call_operand.vmem [shape: bf16[256,128], index: 1, kind: input, shape index: {}]   ;;  %s958_s2 = inlined_call_operand.vmem [shape: f32[1,128], index: 2, kind: input, shape index: {}]   ;;  %s959_s3 = inlined_call_operand.vmem [shape: bf16[128,128], index: 3, kind: output, shape index: {}]  }
   0x1   :  { %s862_s14 = smov 0  }
   0x2 LB: > { %s25_s15 = sadd.s32 1, %s832_s13  ;;  %p633_p0 = scmp.ge.s32.totalorder %s836_s14, 1  ;;  %s836_s14 = sphi %s862_s14, %s13_s14   ;;  %s832_s13 = sphi %s860_s13, %s961_s13   ;;  %s828_s12 = sphi %s858_s12, %s960_s12  }
   0x3   : > { %p27_p1 = scmp.ge.s32.totalorder %s25_s15, 2  ;;  %p170_p2 = scmp.lt.s32.totalorder %s836_s14, 3 }
   0x5   : > { %s963_s15 = smov (%p27_p1, %s25_s15), 0  ;;  %p171_p3 = pnand %p633_p0, %p170_p2 }
   0x6   : > { %v786_v0 = vld [vmem:[%s957_s1 + $0x40] sm:$0xff] (!%p171_p3)   ;;  %s634_s18 = sshll.u32 (!%p171_p3), %s828_s12, 3  ;;  %v788_v2 = vld [vmem:[%s957_s1 + $0x48] sm:$0xff] (!%p171_p3)   ;;  %v790_v4 = vld [vmem:[%s957_s1 + $0x50] sm:$0xff] (!%p171_p3)  }
   0x7   : > { %174 = sbr.rel (%p171_p3) target bundleno = 272 (0x110), region = 32  ;;  %v787_v1 = vld [vmem:[%s957_s1] sm:$0xff] (!%p171_p3)   ;;  %706 = vmatprep.subr.bf16.mxu0 (!%p171_p3), %v786_v0  ;;  %746 = vmatprep.subr.bf16.mxu1 (!%p171_p3), %v786_v0  ;;  %v789_v3 = vld [vmem:[%s957_s1 + $0x8] sm:$0xff] (!%p171_p3)   ;;  %p206_p4 = scmp.lt.s32.totalorder (!%p171_p3), %s634_s18, 15  ;;  %v791_v5 = vld [vmem:[%s957_s1 + $0x10] sm:$0xff] (!%p171_p3)  }
   0x8   : > { %707 = vmatpush3.bf16.msra.mxu0 (!%p171_p3), %v787_v1  ;;  %754 = vmatpush3.bf16.msra.mxu1 (!%p171_p3), %v787_v1  ;;  %v792_v6 = vld [vmem:[%s957_s1 + $0x58] sm:$0xff] (!%p171_p3)   ;;  %v794_v8 = vld [vmem:[%s957_s1 + $0x60] sm:$0xff] (!%p171_p3)   ;;  %v796_v10 = vld [vmem:[%s957_s1 + $0x68] sm:$0xff] (!%p171_p3)  }
   0x9   : > { %708 = vmatprep.subr.bf16.mxu0 (!%p171_p3), %v788_v2  ;;  %747 = vmatprep.subr.bf16.mxu1 (!%p171_p3), %v788_v2  ;;  %v793_v7 = vld [vmem:[%s957_s1 + $0x18] sm:$0xff] (!%p171_p3)   ;;  %v795_v9 = vld [vmem:[%s957_s1 + $0x20] sm:$0xff] (!%p171_p3)   ;;  %v797_v13 = vld [vmem:[%s957_s1 + $0x28] sm:$0xff] (!%p171_p3)  }
   0xa   : > { %v798_v14 = vld [vmem:[%s957_s1 + $0x70] sm:$0xff] (!%p171_p3)   ;;  %v800_v16 = vld [vmem:[%s957_s1 + $0x78] sm:$0xff] (!%p171_p3)   ;;  %v639_v26 = vld [vmem:[%s958_s2] ss:$0 sm:$0xff] (!%p171_p3) }
   0xb   : > { %v799_v15 = vld [vmem:[%s957_s1 + $0x30] sm:$0xff] (!%p171_p3)   ;;  %v801_v17 = vld [vmem:[%s957_s1 + $0x38] sm:$0xff] (!%p171_p3)  }
   0xc   : > { %709 = vmatpush3.bf16.msra.mxu0 (!%p171_p3), %v789_v3  ;;  %755 = vmatpush3.bf16.msra.mxu1 (!%p171_p3), %v789_v3 }
   0xd   : > { %710 = vmatprep.subr.bf16.mxu0 (!%p171_p3), %v790_v4  ;;  %748 = vmatprep.subr.bf16.mxu1 (!%p171_p3), %v790_v4 }
   0xe   : > { %s965_s18 = smov (!%p206_p4, %s634_s18), 15 }
   0xf   : > { %s674_s6 = sshll.u32 %s965_s18, 3  ;;  %s638_s5 = sshll.u32 %s965_s18, 2 }
  0x10   : > { %711 = vmatpush3.bf16.msra.mxu0 %v791_v5  ;;  %756 = vmatpush3.bf16.msra.mxu1 %v791_v5  ;;  %s909_s11 = scalar_lea.vmem %s956_s0, %s674_s6  ;;  %s226_s8 = scalar_lea.vmem %s959_s3, %s638_s5 }
  0x11   : > { %712 = vmatprep.subr.bf16.mxu0 %v792_v6  ;;  %749 = vmatprep.subr.bf16.mxu1 %v792_v6  ;;  %v804_v11 = vld [vmem:[%s909_s11 + $0x4] ss:$8 sps:$4 sm:$0xff]   ;;  %v802_v18 = vld [vmem:[%s909_s11] ss:$8 sps:$4 sm:$0xff]   ;;  %v808_v20 = vld [vmem:[%s909_s11 + $0x14] ss:$8 sps:$4 sm:$0xff]  }
  0x12   : > { %v807_v12 = vld [vmem:[%s909_s11 + $0x24] ss:$8 sps:$4 sm:$0xff]   ;;  %444 = vmatprep.mubr.bf16.mxu0 %v804_v11  ;;  %v805_v19 = vld [vmem:[%s909_s11 + $0x20] ss:$8 sps:$4 sm:$0xff]   ;;  %v810_v21 = vld [vmem:[%s909_s11 + $0x34] ss:$8 sps:$4 sm:$0xff]  }
  0x13   : > { %460 = vmatprep.mubr.bf16.mxu1 %v807_v12  ;;  %v812_v22 = vld [vmem:[%s909_s11 + $0x10] ss:$8 sps:$4 sm:$0xff]  }
  0x14   : > { %713 = vmatpush3.bf16.msra.mxu0 %v793_v7  ;;  %757 = vmatpush3.bf16.msra.mxu1 %v793_v7  ;;  %v813_v23 = vld [vmem:[%s909_s11 + $0x30] ss:$8 sps:$4 sm:$0xff]  }
  0x15   : > { %714 = vmatprep.subr.bf16.mxu0 %v794_v8  ;;  %750 = vmatprep.subr.bf16.mxu1 %v794_v8 }
  0x18   : > { %715 = vmatpush3.bf16.msra.mxu0 %v795_v9  ;;  %758 = vmatpush3.bf16.msra.mxu1 %v795_v9 }
  0x19   : > { %716 = vmatprep.subr.bf16.mxu0 %v796_v10  ;;  %751 = vmatprep.subr.bf16.mxu1 %v796_v10 }
  0x1c   : > { %717 = vmatpush3.bf16.msra.mxu0 %v797_v13  ;;  %759 = vmatpush3.bf16.msra.mxu1 %v797_v13 }
  0x1d   : > { %718 = vmatprep.subr.bf16.mxu0 %v798_v14  ;;  %752 = vmatprep.subr.bf16.mxu1 %v798_v14 }
  0x20   : > { %719 = vmatpush3.bf16.msra.mxu0 %v799_v15  ;;  %760 = vmatpush3.bf16.msra.mxu1 %v799_v15 }
  0x21   : > { %720 = vmatprep.subr.bf16.mxu0 %v800_v16  ;;  %753 = vmatprep.subr.bf16.mxu1 %v800_v16 }
  0x24   : > { %721 = vmatpush3.bf16.msra.mxu0 %v801_v17  ;;  %761 = vmatpush3.bf16.msra.mxu1 %v801_v17 }
  0x27   : > { %445 = vmatmul.mubr.bf16.vlgmr.msra.gmra.mrb[0].mxu0 %v802_v18  ;;  %461 = vmatmul.mubr.bf16.vlgmr.msra.gmra.mrb[0].mxu1 %v805_v19 }
  0x28   : > { %452 = vmatprep.mubr.bf16.mxu0 %v808_v20  ;;  %468 = vmatprep.mubr.bf16.mxu1 %v810_v21 }
  0x2f   : > { %453 = vmatmul.mubr.bf16.gmra.mrb[4].mxu0 %v812_v22  ;;  %469 = vmatmul.mubr.bf16.gmra.mrb[4].mxu1 %v813_v23 }
  0xfa   : > { %v722_v24 = vpop.f32.mrb[0].mxu0  ;;  %v734_v25 = vpop.f32.mrb[0].mxu1 }
  0xfb   : > { %v723_v27 = vpop.f32.mrb[1].mxu0  ;;  %v735_v28 = vpop.f32.mrb[1].mxu1 }
  0xfc   : > { %v724_v29 = vadd.f32 %v723_v27, %v722_v24  ;;  %v736_v30 = vadd.f32 %v735_v28, %v734_v25  ;;  %v725_v31 = vpop.f32.mrb[2].mxu0  ;;  %v737_v32 = vpop.f32.mrb[2].mxu1 }
  0xfd   : > { %v726_v33 = vpop.f32.mrb[3].mxu0  ;;  %v738_v34 = vpop.f32.mrb[3].mxu1 }
  0xfe   : > { %v447_v35 = vadd.f32 %v724_v29, %v639_v26  ;;  %v463_v36 = vadd.f32 %v736_v30, %v639_v26  ;;  %v727_v37 = vadd.f32 %v726_v33, %v725_v31  ;;  %v739_v38 = vadd.f32 %v738_v34, %v737_v32 }
 0x100   : > { %v450_v39 = vadd.f32 %v727_v37, %v639_v26  ;;  %v466_v40 = vadd.f32 %v739_v38, %v639_v26  ;;  %v477_v41 = vmax.f32 %v447_v35, 0.0  ;;  %v481_v42 = vmax.f32 %v463_v36, 0.0 }
 0x102   : > { %v478_v43 = vmax.f32 %v450_v39, 0.0  ;;  %v482_v44 = vmax.f32 %v466_v40, 0.0  ;;  %v728_v45 = vpop.f32.mrb[4].mxu0  ;;  %v740_v46 = vpop.f32.mrb[4].mxu1 }
 0x103   : > { %v729_v47 = vpop.f32.mrb[5].mxu0  ;;  %v741_v48 = vpop.f32.mrb[5].mxu1 }
 0x104   : > { %v686_v49 = vpack.c.bf16 %v478_v43, %v477_v41  ;;  %v696_v50 = vpack.c.bf16 %v482_v44, %v481_v42  ;;  %v730_v51 = vadd.f32 %v729_v47, %v728_v45  ;;  %v742_v52 = vadd.f32 %v741_v48, %v740_v46  ;;  %v731_v53 = vpop.f32.mrb[6].mxu0  ;;  %v743_v54 = vpop.f32.mrb[6].mxu1 }
 0x105   : > { %v732_v55 = vpop.f32.mrb[7].mxu0  ;;  %v744_v56 = vpop.f32.mrb[7].mxu1 }
 0x106   : > { %687 = vst [vmem:[%s226_s8] sm:$0xff] %v686_v49   ;;  %704 = vst [vmem:[%s226_s8 + $0x10] sm:$0xff] %v696_v50   ;;  %v455_v57 = vadd.f32 %v730_v51, %v639_v26  ;;  %v471_v58 = vadd.f32 %v742_v52, %v639_v26  ;;  %v733_v59 = vadd.f32 %v732_v55, %v731_v53 }
 0x107   : > { %v745_v60 = vadd.f32 %v744_v56, %v743_v54 }
 0x108   : > { %v458_v61 = vadd.f32 %v733_v59, %v639_v26  ;;  %v479_v63 = vmax.f32 %v455_v57, 0.0  ;;  %v483_v0 = vmax.f32 %v471_v58, 0.0 }
 0x109   : > { %v474_v62 = vadd.f32 %v745_v60, %v639_v26 }
 0x10a   : > { %v480_v1 = vmax.f32 %v458_v61, 0.0 }
 0x10b   : > { %v484_v2 = vmax.f32 %v474_v62, 0.0 }
 0x10c   : > { %v691_v3 = vpack.c.bf16 %v480_v1, %v479_v63 }
 0x10d   : > { %v701_v4 = vpack.c.bf16 %v484_v2, %v483_v0 }
 0x10e   : > { %703 = vst [vmem:[%s226_s8 + $0x8] sm:$0xff] %v691_v3  }
 0x10f   : > { %705 = vst [vmem:[%s226_s8 + $0x18] sm:$0xff] %v701_v4  }
 0x110 PF: > { %s13_s14 = sadd.s32 1, %s836_s14   ;;  %s960_s12 = smov %s832_s13 }
 0x111   : > { %p10_p5 = scmp.ge.s32.totalorder %s13_s14, 4   ;;  %s961_s13 = smov %s963_s15 }
 0x113   :  { %12 = sbr.rel (!%p10_p5) target bundleno = 2 (0x2), region = 68 }

// kernel: _forward.5
= control target key start
LH: loop header
LB: loop body
LE: loop exit
PB: predicated region body
PF: predicated region fallthrough
CT: control target
= control target key end

     0   :  { %s1031_s12 = smov 0   ;;  %s1033_s13 = smov 0   ;;  %s1183_s0 = inlined_call_operand.vmem [shape: bf16[18,256], index: 0, kind: input, shape index: {}]   ;;  %s1184_s1 = inlined_call_operand.vmem [shape: bf16[256,128], index: 1, kind: input, shape index: {}]   ;;  %s1185_s2 = inlined_call_operand.vmem [shape: f32[1,128], index: 2, kind: input, shape index: {}]   ;;  %s1186_s3 = inlined_call_operand.vmem [shape: bf16[18,128], index: 3, kind: output, shape index: {}]  }
   0x1   :  { %s1035_s14 = smov 0   ;;  %s1037_s15 = smov 0  }
   0x2   :  { %s1039_s16 = smov 0  }
   0x3 LB: > { %s702_s17 = sadd.s32 4294967295, %s977_s16   ;;  %s25_s18 = sadd.s32 1, %s973_s15  ;;  %s977_s16 = sphi %s1039_s16, %s13_s16   ;;  %s973_s15 = sphi %s1037_s15, %s1191_s15   ;;  %s969_s14 = sphi %s1035_s14, %s1190_s14   ;;  %s965_s13 = sphi %s1033_s13, %s1189_s13   ;;  %s961_s12 = sphi %s1031_s12, %s1188_s12  }
   0x4   : > { %p27_p0 = scmp.ge.s32.totalorder %s25_s18, 2  ;;  %s112_s19 = sadd.s32 1, %s965_s13 }
   0x5   : > { %p122_p1 = scmp.ne.s32.totalorder %s965_s13, %s961_s12  ;;  %p123_p2 = scmp.eq.s32.totalorder %s702_s17, 1 }
   0x6   : > { %s1193_s18 = smov (%p27_p0, %s25_s18), 0  ;;  %p708_p4 = scmp.ge.s32.totalorder %s977_s16, 1 }
   0x7   : > { %p1063_p3 = por %p123_p2, %p122_p1  ;;  %s107_s21 = ssub.s32 %s973_s15, %s1193_s18 }
   0x8   : > { %p180_p5 = scmp.lt.s32.totalorder %s977_s16, 3  ;;  %p110_p6 = scmp.eq.s32.totalorder %s107_s21, 0 }
   0xa   : > { %p181_p7 = pnand %p708_p4, %p180_p5 }
   0xb   : > { %s1072_s22 = scalar_select %p110_p6, %s965_s13, %s112_s19  }
   0xc   : > { %184 = sbr.rel (%p181_p7) target bundleno = 318 (0x13e), region = 32  ;;  %v888_v0 = vld [vmem:[%s1184_s1 + $0x40] sm:$0xff] (!%p181_p7)   ;;  %s1078_s25 = sshll.u32 (!%p181_p7), %s969_s14, 1  ;;  %v890_v2 = vld [vmem:[%s1184_s1 + $0x48] sm:$0xff] (!%p181_p7)   ;;  %v892_v4 = vld [vmem:[%s1184_s1 + $0x50] sm:$0xff] (!%p181_p7)  }
   0xd   : > { %v889_v1 = vld [vmem:[%s1184_s1] sm:$0xff] (!%p181_p7)   ;;  %762 = vmatprep.subr.bf16.mxu0 (!%p181_p7), %v888_v0  ;;  %v891_v3 = vld [vmem:[%s1184_s1 + $0x8] sm:$0xff] (!%p181_p7)   ;;  %p222_p8 = scmp.lt.s32.totalorder (!%p181_p7), %s1078_s25, 2  ;;  %v893_v5 = vld [vmem:[%s1184_s1 + $0x10] sm:$0xff] (!%p181_p7)   ;;  %s213_s27 = sand.u32 (!%p181_p7), 1, %s961_s12  }
   0xe   : > { %763 = vmatpush3.bf16.msra.mxu0 (!%p181_p7), %v889_v1  ;;  %v894_v6 = vld [vmem:[%s1184_s1 + $0x58] sm:$0xff] (!%p181_p7)   ;;  %v896_v8 = vld [vmem:[%s1184_s1 + $0x60] sm:$0xff] (!%p181_p7)   ;;  %v898_v10 = vld [vmem:[%s1184_s1 + $0x68] sm:$0xff] (!%p181_p7)   ;;  %s709_s29 = sshll.u32 (!%p181_p7), %s213_s27, 3 }
   0xf   : > { %764 = vmatprep.subr.bf16.mxu0 (!%p181_p7), %v890_v2  ;;  %v895_v7 = vld [vmem:[%s1184_s1 + $0x18] sm:$0xff] (!%p181_p7)   ;;  %v897_v9 = vld [vmem:[%s1184_s1 + $0x20] sm:$0xff] (!%p181_p7)   ;;  %v899_v12 = vld [vmem:[%s1184_s1 + $0x28] sm:$0xff] (!%p181_p7)  }
  0x10   : > { %v900_v13 = vld [vmem:[%s1184_s1 + $0x70] sm:$0xff] (!%p181_p7)   ;;  %v902_v15 = vld [vmem:[%s1184_s1 + $0x78] sm:$0xff] (!%p181_p7)   ;;  %v713_v19 = vld [vmem:[%s1185_s2] ss:$0 sm:$0xff] (!%p181_p7) }
  0x11   : > { %v901_v14 = vld [vmem:[%s1184_s1 + $0x30] sm:$0xff] (!%p181_p7)   ;;  %v903_v16 = vld [vmem:[%s1184_s1 + $0x38] sm:$0xff] (!%p181_p7)  }
  0x12   : > { %765 = vmatpush3.bf16.msra.mxu0 (!%p181_p7), %v891_v3 }
  0x13   : > { %s223_s9 = scalar_select %p222_p8, %s1078_s25, 2  ;;  %766 = vmatprep.subr.bf16.mxu0 %v892_v4 }
  0x14   : > { %s454_s30 = ssub.s32 (%p1063_p3), 3, %s1078_s25  ;;  %s754_s4 = sshll.u32 (%p1063_p3), %s969_s14, 3 }
  0x15   : > { %s751_s21 = sshll.u32 %s223_s9, 3  ;;  %p455_p9 = scmp.lt.s32.totalorder (%p1063_p3), %s454_s30, 2 }
  0x16   : > { %767 = vmatpush3.bf16.msra.mxu0 %v893_v5  ;;  %s226_s28 = scalar_lea.vmem %s1183_s0, %s751_s21  ;;  %s1144_s6 = scalar_lea.vmem (%p1063_p3), %s1186_s3, %s754_s4  }
  0x17   : > { %768 = vmatprep.subr.bf16.mxu0 %v894_v6  ;;  %v906_v11 = vld [vmem:[%s226_s28 + $0x4] ss:$8 sps:$4 sm:$0xff]   ;;  %v904_v17 = vld [vmem:[%s226_s28] ss:$8 sps:$4 sm:$0xff]   ;;  %s1134_s28 = scalar_lea.vmem [#allocation2], %s709_s29  }
  0x18   : > { %425 = vmatprep.mubr.bf16.mxu0 %v906_v11 }
  0x1a   : > { %769 = vmatpush3.bf16.msra.mxu0 %v895_v7 }
  0x1b   : > { %770 = vmatprep.subr.bf16.mxu0 %v896_v8 }
  0x1e   : > { %771 = vmatpush3.bf16.msra.mxu0 %v897_v9 }
  0x1f   : > { %772 = vmatprep.subr.bf16.mxu0 %v898_v10 }
  0x22   : > { %773 = vmatpush3.bf16.msra.mxu0 %v899_v12 }
  0x23   : > { %774 = vmatprep.subr.bf16.mxu0 %v900_v13 }
  0x26   : > { %775 = vmatpush3.bf16.msra.mxu0 %v901_v14 }
  0x27   : > { %776 = vmatprep.subr.bf16.mxu0 %v902_v15 }
  0x2a   : > { %777 = vmatpush3.bf16.msra.mxu0 %v903_v16 }
  0x2d   : > { %426 = vmatmul.mubr.bf16.vlgmr.msra.gmra.mrb[0].mxu0 %v904_v17 }
 0x100   : > { %v778_v18 = vpop.f32.mrb[0].mxu0 }
 0x101   : > { %v779_v20 = vpop.f32.mrb[1].mxu0 }
 0x102   : > { %v780_v21 = vadd.f32 %v779_v20, %v778_v18  ;;  %v781_v22 = vpop.f32.mrb[2].mxu0 }
 0x103   : > { %v782_v23 = vpop.f32.mrb[3].mxu0 }
 0x104   : > { %v428_v24 = vadd.f32 %v780_v21, %v713_v19  ;;  %v783_v25 = vadd.f32 %v782_v23, %v781_v22 }
 0x106   : > { %v431_v26 = vadd.f32 %v783_v25, %v713_v19  ;;  %v434_v27 = vmax.f32 %v428_v24, 0.0  ;;  %452 = sbr.rel (!%p1063_p3) target bundleno = 318 (0x13e), region = 36 }
 0x108   : > { %v435_v28 = vmax.f32 %v431_v26, 0.0 }
 0x10a   : > { %v760_v29 = vpack.c.bf16 %v435_v28, %v434_v27 }
 0x10c   : > { %761 = vst [vmem:[%s1134_s28] sm:$0xff] %v760_v29  }
 0x10d   : > { %s1195_s30 = smov (!%p455_p9, %s454_s30), 2 }
 0x10e   : > { %s736_s7 = sshll.u32 %s1195_s30, 6 }
 0x10f   : > { %p739_p10 = scmp.eq.s32.totalorder %s736_s7, 0 }
 0x110   : > { %s1150_s8 = sshrl.u32 (!%p739_p10), %s1195_s30, 1 }
 0x111   : > { %464 = sbr.rel (%p739_p10) target bundleno = 318 (0x13e), region = 40  ;;  %p740_p11 = scmp.le.s32.totalorder (!%p739_p10), %s1150_s8, 0 }
 0x118   : > { %632 = sbr.rel (%p740_p11) target bundleno = 297 (0x129), region = 118  ;;  %s979_s14 = smov (!%p740_p11), %s1144_s6  }
 0x119   : > { %s983_s20 = smov (!%p740_p11), %s1134_s28   ;;  %s987_s25 = smov (!%p740_p11), 0  }
 0x11a   : > { %s991_s9 = smov (!%p740_p11), 0  }
 0x11f LB: >> { %v480_v30 = vld [vmem:[%s985_s20] sm:$0xf]  ;;  %v482_v31 = vld [vmem:[%s985_s20 + $0x4] sm:$0xf]  ;;  %s484_s10 = sadd.s32 1, %s989_s25  ;;  %s474_s9 = sadd.s32 1, %s993_s9   ;;  %s993_s9 = sphi %s991_s9, %s474_s9   ;;  %s989_s25 = sphi %s987_s25, %s988_s25   ;;  %s985_s20 = sphi %s983_s20, %s489_s20   ;;  %s981_s14 = sphi %s979_s14, %s490_s14  }
 0x120   : >> { %481 = vst [vmem:[%s981_s14] sm:$0xf] %v480_v30  ;;  %483 = vst [vmem:[%s981_s14 + $0x4] sm:$0xf] %v482_v31  ;;  %p485_p12 = scmp.ge.s32.totalorder %s484_s10, %s1150_s8  ;;  %p473_p13 = scmp.ge.s32.totalorder %s474_s9, %s1150_s8 }
 0x122   : >> { %s1197_s10 = smov (%p485_p12, %s484_s10), 0  ;;  %476 = sbr.rel (!%p473_p13) target bundleno = 287 (0x11f), region = 124 }
 0x123   : >> { %s741_s11 = sshll.u32 %s1197_s10, 3  ;;  %s988_s25 = smov %s1197_s10  }
 0x124   : >> { %s489_s20 = scalar_lea.vmem %s1134_s28, %s741_s11 [#allocation2]   ;;  %s490_s14 = scalar_lea.vmem %s1144_s6, %s741_s11  }
 0x129 PF: > { %s1160_s17 = sand.u32 1, %s1195_s30   ;;  %s755_s19 = sshll.u32 %s1150_s8, 3 }
 0x12a   : > { %s495_s21 = scalar_lea.vmem %s1134_s28, %s755_s19 [#allocation2]   ;;  %s497_s23 = scalar_lea.vmem %s1144_s6, %s755_s19  }
 0x12b   : > { %p746_p0 = scmp.le.s32.totalorder %s1160_s17, 0 }
 0x12c   : > { %s995_s24 = smov (!%p746_p0), %s497_s23   ;;  %s999_s26 = smov (!%p746_p0), %s495_s21  }
 0x12d   : > { %646 = sbr.rel (%p746_p0) target bundleno = 318 (0x13e), region = 129  ;;  %s1003_s27 = smov (!%p746_p0), 0  }
 0x12e   : > { %s1007_s29 = smov (!%p746_p0), 0  }
 0x134 LB: >> { %v507_v32 = vld [vmem:[%s1001_s26] sm:$0xf]  ;;  %s509_s30 = sadd.s32 1, %s1005_s27  ;;  %s501_s29 = sadd.s32 1, %s1009_s29   ;;  %s1009_s29 = sphi %s1007_s29, %s501_s29   ;;  %s1005_s27 = sphi %s1003_s27, %s1004_s27   ;;  %s1001_s26 = sphi %s999_s26, %s514_s26   ;;  %s997_s24 = sphi %s995_s24, %s515_s24  }
 0x135   : >> { %508 = vst [vmem:[%s997_s24] sm:$0xf] %v507_v32  ;;  %p510_p1 = scmp.ge.s32.totalorder %s509_s30, %s1160_s17  ;;  %p500_p2 = scmp.ge.s32.totalorder %s501_s29, %s1160_s17 }
 0x137   : >> { %s1199_s30 = smov (%p510_p1, %s509_s30), 0  ;;  %503 = sbr.rel (!%p500_p2) target bundleno = 308 (0x134), region = 135 }
 0x138   : >> { %s747_s28 = sshll.u32 %s1199_s30, 2  ;;  %s1004_s27 = smov %s1199_s30  }
 0x139   : >> { %s514_s26 = scalar_lea.vmem %s495_s21, %s747_s28 [#allocation2]   ;;  %s515_s24 = scalar_lea.vmem %s497_s23, %s747_s28  }
 0x13e PF: > { %s13_s16 = sadd.s32 1, %s977_s16   ;;  %s1188_s12 = smov %s965_s13 }
 0x13f   : > { %p10_p3 = scmp.ge.s32.totalorder %s13_s16, 4   ;;  %s1189_s13 = smov %s1072_s22 }
 0x140   : > { %s1190_s14 = smov %s973_s15  ;;  %s1191_s15 = smov %s1193_s18 }
 0x141   :  { %12 = sbr.rel (!%p10_p3) target bundleno = 3 (0x3), region = 146 }

// kernel: _forward.6
= control target key start
LH: loop header
LB: loop body
LE: loop exit
PB: predicated region body
PF: predicated region fallthrough
CT: control target
= control target key end

     0   :  { %v359_v1 = vmov 0.0   ;;  %vm360_vm0 = vmmov 0   ;;  %v361_v6 = vmov 1966171168   ;;  %v71_v8 = vlaneseq  ;;  %s445_s1 = inlined_call_operand.vmem [shape: bf16[288,128], index: 1, kind: input, shape index: {}]   ;;  %s446_s0 = inlined_call_operand.vmem [shape: bf16[2,288], index: 0, kind: input, shape index: {}]   ;;  %s447_s2 = inlined_call_operand.vmem [shape: f32[1,128], index: 2, kind: input, shape index: {}]   ;;  %s448_s3 = inlined_call_operand.vmem [shape: bf16[2,128], index: 3, kind: output, shape index: {}]  }
   0x1   :  { %v341_v0 = vld [vmem:[%s445_s1 + $0x40] sm:$0xff]   ;;  %330 = vmatprep.subr.bf16.mxu1 %v359_v1  ;;  %334 = vmatprep.mubr.msk.bf16.mxu1 %vm360_vm0, %v359_v1  ;;  %v343_v3 = vld [vmem:[%s445_s1 + $0x48] sm:$0xff]   ;;  %v345_v5 = vld [vmem:[%s445_s1 + $0x50] sm:$0xff]   ;;  %v69_v7 = vunpack.c.l.s4 %v361_v6  ;;  %vm193_vm1 = vcmask 261120  }
   0x2   :  { %v342_v2 = vld [vmem:[%s445_s1] sm:$0xff]   ;;  %305 = vmatprep.subr.bf16.mxu0 %v341_v0  ;;  %v344_v4 = vld [vmem:[%s445_s1 + $0x8] sm:$0xff]   ;;  %v346_v9 = vld [vmem:[%s445_s1 + $0x10] sm:$0xff]   ;;  %v72_v12 = vshrl.u32 %v71_v8, 7 }
   0x3   :  { %306 = vmatpush3.bf16.msra.mxu0 %v342_v2  ;;  %v347_v10 = vld [vmem:[%s445_s1 + $0x58] sm:$0xff]   ;;  %v70_v11 = vunpack.c.0.s8 %v69_v7  ;;  %v349_v14 = vld [vmem:[%s445_s1 + $0x60] sm:$0xff]   ;;  %v351_v18 = vld [vmem:[%s445_s1 + $0x68] sm:$0xff]  }
   0x4   :  { %307 = vmatprep.subr.bf16.mxu0 %v343_v3  ;;  %v348_v13 = vld [vmem:[%s445_s1 + $0x18] sm:$0xff]   ;;  %v355_v15 = vld [vmem:[%s445_s1 + $0x80] sm:$0xff]   ;;  %v358_v21 = vld [vmem:[%s445_s1 + $0x88] sm:$0xff]  }
   0x5   :  { %v73_v16 = vsub.s32 %v70_v11, %v72_v12  ;;  %v350_v17 = vld [vmem:[%s445_s1 + $0x20] sm:$0xff]   ;;  %331 = vmatpush3.bf16.msra.mxu1 %v355_v15  ;;  %v352_v23 = vld [vmem:[%s445_s1 + $0x28] sm:$0xff]   ;;  %v353_v24 = vld [vmem:[%s445_s1 + $0x70] sm:$0xff]  }
   0x6   :  { %332 = vmatprep.subr.bf16.mxu1 %v359_v1  ;;  %v285_v19 = vld.sshfl [vmem:[%s446_s0] sm:$0x13 pattern:$0x75316420]  ;;  %v354_v27 = vld [vmem:[%s445_s1 + $0x30] sm:$0xff]   ;;  %v356_v28 = vld [vmem:[%s445_s1 + $0x78] sm:$0xff]  }
   0x7   :  { %308 = vmatpush3.bf16.msra.mxu0 %v344_v4  ;;  %v67_v20 = vcombine.high %v285_v19, %v285_v19  ;;  %v74_v22 = vrot.slane %v285_v19, %v73_v16  ;;  %v357_v29 = vld [vmem:[%s445_s1 + $0x38] sm:$0xff]   ;;  %v284_v36 = vld [vmem:[%s447_s2] ss:$0 sm:$0xff] }
   0x8   :  { %309 = vmatprep.subr.bf16.mxu0 %v345_v5 }
   0x9   :  { %v81_v25 = vrot.slane %v67_v20, %v73_v16  ;;  %333 = vmatpush3.bf16.msra.mxu1 %v358_v21  ;;  %v82_v26 = vcombine.high %v74_v22, %v74_v22 }
   0xb   :  { %310 = vmatpush3.bf16.msra.mxu0 %v346_v9  ;;  %229 = vmatprep.mubr.bf16.mxu0 %v81_v25 }
   0xc   :  { %311 = vmatprep.subr.bf16.mxu0 %v347_v10  ;;  %335 = vmatmul.mubr.msk.bf16.vlgmr.msra.gmra.mrb[0].mxu1 %vm193_vm1, %v82_v26 }
   0xf   :  { %312 = vmatpush3.bf16.msra.mxu0 %v348_v13 }
  0x10   :  { %313 = vmatprep.subr.bf16.mxu0 %v349_v14 }
  0x13   :  { %314 = vmatpush3.bf16.msra.mxu0 %v350_v17 }
  0x14   :  { %315 = vmatprep.subr.bf16.mxu0 %v351_v18 }
  0x17   :  { %316 = vmatpush3.bf16.msra.mxu0 %v352_v23 }
  0x18   :  { %317 = vmatprep.subr.bf16.mxu0 %v353_v24 }
  0x1b   :  { %318 = vmatpush3.bf16.msra.mxu0 %v354_v27 }
  0x1c   :  { %319 = vmatprep.subr.bf16.mxu0 %v356_v28 }
  0x1f   :  { %320 = vmatpush3.bf16.msra.mxu0 %v357_v29 }
  0x22   :  { %230 = vmatmul.mubr.bf16.vlgmr.msra.gmra.mrb[0].mxu0 %v74_v22 }
  0xdf   :  { %v271_v30 = vpop.f32.mrb[0].mxu1 }
  0xe0   :  { %v336_v31 = vpop.f32.mrb[1].mxu1 }
  0xe1   :  { %v274_v32 = vpop.f32.mrb[2].mxu1 }
  0xe2   :  { %v337_v33 = vpop.f32.mrb[3].mxu1 }
  0xf5   :  { %v321_v34 = vpop.f32.mrb[0].mxu0 }
  0xf6   :  { %v322_v35 = vpop.f32.mrb[1].mxu0 }
  0xf7   :  { %v323_v37 = vadd.f32 %v322_v35, %v321_v34  ;;  %v324_v38 = vpop.f32.mrb[2].mxu0 }
  0xf8   :  { %v325_v39 = vpop.f32.mrb[3].mxu0 }
  0xf9   :  { %v232_v40 = vadd.f32 %v323_v37, %v284_v36 }
  0xfb   :  { %v272_v41 = vadd.f32 %v271_v30, %v232_v40 }
  0xfd   :  { %v277_v42 = vmax.f32 %v272_v41, 0.0 }
  0xff   :  { %v278_v43 = vpack.c.bf16 %v277_v42, %v277_v42 }
 0x101   :  { %279 = vst [vmem:[%s448_s3] sm:$0x1] %v278_v43 }

// kernel: _forward.7
= control target key start
LH: loop header
LB: loop body
LE: loop exit
PB: predicated region body
PF: predicated region fallthrough
CT: control target
= control target key end

     0   :  { %v144_v1 = vmov 0.0   ;;  %vm145_vm0 = vmmov 0   ;;  %s191_s0 = inlined_call_operand.vmem [shape: bf16[2,32], index: 0, kind: input, shape index: {}]   ;;  %s192_s1 = inlined_call_operand.vmem [shape: bf16[32,128], index: 1, kind: input, shape index: {}]   ;;  %s193_s2 = inlined_call_operand.vmem [shape: f32[1,128], index: 2, kind: input, shape index: {}]   ;;  %s194_s3 = inlined_call_operand.hbm [shape: f32[2,128], index: 3, kind: output, shape index: {}]  }
   0x1   :  { %v118_v0 = vld [vmem:[%s192_s1] sm:$0xff]   ;;  %107 = vmatprep.subr.bf16.mxu0 %v144_v1  ;;  %v119_v2 = vld [vmem:[%s192_s1 + $0x8] sm:$0xff]   ;;  %111 = vmatprep.mubr.msk.bf16.mxu0 %vm145_vm0, %v144_v1 }
   0x2   :  { %108 = vmatpush3.bf16.msra.mxu0 %v118_v0 }
   0x3   :  { %109 = vmatprep.subr.bf16.mxu0 %v144_v1 }
   0x4   :  { %8 = vsyncpa [#allocation3], 0  ;;  %v16_v3 = vld [vmem:[%s191_s0] sm:$0x1]  ;;  %vm40_vm1 = vcmask 261120   ;;  %s146_s20 = smov [#allocation2]  }
   0x5   :  { %v100_v4 = vld [vmem:[%s193_s2] ss:$0 sm:$0xff]  ;;  %s92_s21 = sshll.u32 %s146_s20, 4  ;;  %s93_s21 = int_to_ptr.vmem [resolvable:$true] %s92_s21 }
   0x6   :  { %110 = vmatpush3.bf16.msra.mxu0 %v119_v2  ;;  %s120_s1 = scalar_lea.vmem %s93_s21, 32  ;;  %p125_p1 = scmp.lt.s32.totalorder %s93_s21, %s93_s21 }
   0x7   :  { %p121_p0 = scmp.ne.s32.totalorder %s93_s21, %s120_s1  ;;  %p126_p2 = scmp.lt.s32.totalorder %s120_s1, %s120_s1 }
   0x9   :  { %112 = vmatmul.mubr.msk.bf16.vlgmr.msra.gmra.mrb[0].mxu0 %vm40_vm1, %v16_v3  ;;  %p127_p3 = por %p126_p2, %p125_p1 }
   0xb   :  { %p128_p4 = pnand %p127_p3, %p121_p0 }
  0xdc   :  { %v78_v5 = vpop.f32.mrb[0].mxu0 }
  0xdd   :  { %v79_v6 = vadd.f32 %v100_v4, %v78_v5  ;;  %v113_v7 = vpop.f32.mrb[1].mxu0 }
  0xde   :  { %v81_v8 = vpop.f32.mrb[2].mxu0 }
  0xdf   :  { %v84_v9 = vmax.f32 %v79_v6, 0.0  ;;  %v114_v10 = vpop.f32.mrb[3].mxu0 }
  0xe1   :  { %85 = vst [vmem:[#allocation2] sm:$0x3] %v84_v9 }
  0xe2   :  { %131 = shalt.err (!%p128_p4)
}
  0xe3   :  { %s132_s2 = scalar_lea.hbm %s194_s3, 32 }
  0xe4   :  { %p133_p5 = scmp.ne.s32.totalorder %s194_s3, %s132_s2  ;;  %p136_p6 = scmp.lt.u32.totalorder %s132_s2, %s194_s3 }
  0xe6   :  { %p138_p7 = pnand %p136_p6, %p133_p5 }
  0xe8   :  { %141 = shalt.err (!%p138_p7)
}
  0xe9   :  { %95 = dma.vmem_to_hbm [thread:$0]  %s93_s21, 32, %s194_s3, [#allocation3]  }
  0xea   :  { %142 = dma.done.wait [#allocation3], 32  }
  0xeb   :  { %143 = vsyncadd [#allocation3], 4294967264 }
  0xec   :  { %99 = vsyncpa [#allocation3], 1 }

</bundles_post_ra>
